<compile_context>
chip_gen: v6e
topology: v6e:2x2x1
jax: 0.10.0
libtpu: 0.0.40
codegen_flags: <defaults>
</compile_context>

<pallas_src>
import jax
import jax.numpy as jnp
from jax.experimental import pallas as pl
from jax.experimental.pallas import tpu as pltpu


def _mf_kernel(uc_ref, ic_ref, uT_ref, iT_ref, w_ref, b_ref, o_ref):
    # uc_ref, ic_ref : (1, TB) int32 coordinates for this batch tile (VMEM)
    # uT_ref         : (F, U_pad) user factor table, transposed (VMEM, resident)
    # iT_ref         : (F, I_pad) item factor table, transposed (VMEM, resident)
    # w_ref          : (F, 1)  linear weight
    # b_ref          : (1, 1)  linear bias (SMEM scalar)
    # o_ref          : (1, TB) lane-dense output tile
    uc = uc_ref[...]                      # (1, TB)
    ic = ic_ref[...]                      # (1, TB)
    U = uT_ref.shape[1]
    I = iT_ref.shape[1]
    TB = uc.shape[1]

    # In-kernel gather via one-hot matmul (exact: each column selects one row).
    oh_u = (jax.lax.broadcasted_iota(jnp.int32, (U, TB), 0) == uc).astype(jnp.float32)
    oh_i = (jax.lax.broadcasted_iota(jnp.int32, (I, TB), 0) == ic).astype(jnp.float32)
    u_g = jnp.dot(uT_ref[...], oh_u, preferred_element_type=jnp.float32)  # (F, TB)
    i_g = jnp.dot(iT_ref[...], oh_i, preferred_element_type=jnp.float32)  # (F, TB)

    # Linear(F -> 1) as VPU mul (w broadcast over lanes) + sublane reduce (XLU).
    prod = u_g * i_g * w_ref[...]                       # (F, TB)
    s = jnp.sum(prod, axis=0, keepdims=True)            # (1, TB)
    o_ref[...] = jnp.maximum(s + b_ref[0, 0], 0.0).astype(o_ref.dtype)


def mf_forward(user_coords, item_coords, user_factors, item_factors, w, b,
               *, batch_tile=None):
    """Forward pass matching PyTorchModel.forward.

    user_coords, item_coords: int (B,)
    user_factors: (U, F), item_factors: (I, F)
    w: (F, 1), b: (1,)  -> returns (B, 1) float32
    """
    B = user_coords.shape[0]
    U, F = user_factors.shape
    I, _ = item_factors.shape

    # Batch tile: lane-dense (multiple of 128).  512 rows at large B amortizes
    # per-step overhead while staying far under VMEM limits on all generations
    # (v5e 16 MiB scoped, v7x 64 MiB physical): per-step live VMEM here is
    # ~ tables + 2x2 double-buffered (1, TB) int32 tiles + output tiles.
    if batch_tile is None:
        batch_tile = 128 if B <= 1024 else 512
    TB = batch_tile
    B_pad = ((B + TB - 1) // TB) * TB
    num_tiles = B_pad // TB

    # Pad coordinates (index 0 is always valid; padded rows are sliced off).
    uc = jnp.pad(user_coords.astype(jnp.int32), (0, B_pad - B)).reshape(1, B_pad)
    ic = jnp.pad(item_coords.astype(jnp.int32), (0, B_pad - B)).reshape(1, B_pad)

    # Layout plumbing: tables transposed to (F, rows); rows padded to a
    # multiple of 8 with zeros (never selected by the one-hot).
    def _pad_rows(t):
        r = t.shape[0]
        r_pad = ((r + 7) // 8) * 8
        return jnp.pad(t, ((0, r_pad - r), (0, 0)))

    uT = _pad_rows(user_factors.astype(jnp.float32)).T    # (F, U_pad)
    iT = _pad_rows(item_factors.astype(jnp.float32)).T    # (F, I_pad)
    U_pad = uT.shape[1]
    I_pad = iT.shape[1]

    w2 = w.reshape(F, 1).astype(jnp.float32)
    b2 = b.reshape(1, 1).astype(jnp.float32)

    out = pl.pallas_call(
        _mf_kernel,
        out_shape=jax.ShapeDtypeStruct((1, B_pad), jnp.float32),
        grid_spec=pltpu.PrefetchScalarGridSpec(
            num_scalar_prefetch=0,
            grid=(num_tiles,),
            in_specs=[
                pl.BlockSpec((1, TB), lambda t: (0, t)),        # user coords tile
                pl.BlockSpec((1, TB), lambda t: (0, t)),        # item coords tile
                pl.BlockSpec((F, U_pad), lambda t: (0, 0)),     # user table (resident)
                pl.BlockSpec((F, I_pad), lambda t: (0, 0)),     # item table (resident)
                pl.BlockSpec((F, 1), lambda t: (0, 0)),         # linear weight
                pl.BlockSpec(memory_space=pltpu.MemorySpace.SMEM),  # bias scalar
            ],
            out_specs=pl.BlockSpec((1, TB), lambda t: (0, t)),
        ),
        compiler_params=pltpu.CompilerParams(
            dimension_semantics=("parallel",),
        ),
    )(uc, ic, uT, iT, w2, b2)

    return out[0, :B].reshape(B, 1)


def reference_forward(user_coords, item_coords, user_factors, item_factors, w, b):
    u = jnp.take(user_factors, user_coords, axis=0)
    it = jnp.take(item_factors, item_coords, axis=0)
    return jnp.maximum(jnp.dot(u * it, w) + b.reshape(1, 1), 0.0)


if __name__ == "__main__":
    # Deterministic parameter / input construction.
    users_amount = 10
    items_amount = 12
    factors_amount = 32   # F
    batch = 8             # B

    key = jax.random.PRNGKey(0)
    k_u, k_i, k_w, k_b, k_uc, k_ic, k_uc2, k_ic2 = jax.random.split(key, 8)

    # torch.nn.Embedding default init: N(0, 1)
    user_factors = jax.random.normal(k_u, (users_amount, factors_amount), jnp.float32)
    item_factors = jax.random.normal(k_i, (items_amount, factors_amount), jnp.float32)

    # torch.nn.Linear default init: U(-1/sqrt(F), 1/sqrt(F)) for weight and bias
    bound = 1.0 / jnp.sqrt(jnp.float32(factors_amount))
    w = jax.random.uniform(k_w, (factors_amount, 1), jnp.float32, -bound, bound)
    b = jax.random.uniform(k_b, (1,), jnp.float32, -bound, bound)

    user_coordinates = jax.random.randint(k_uc, (batch,), 0, users_amount, jnp.int32)
    item_coordinates = jax.random.randint(k_ic, (batch,), 0, items_amount, jnp.int32)

    out = mf_forward(user_coordinates, item_coordinates,
                     user_factors, item_factors, w, b)
    out = jax.block_until_ready(out)

    ref = reference_forward(user_coordinates, item_coordinates,
                            user_factors, item_factors, w, b)
    assert out.shape == (batch, 1)
    assert jnp.allclose(out, ref, atol=1e-5, rtol=1e-5)

    # Second check: multi-tile batch with a ragged tail (exercises padding path).
    batch2 = 200
    uc2 = jax.random.randint(k_uc2, (batch2,), 0, users_amount, jnp.int32)
    ic2 = jax.random.randint(k_ic2, (batch2,), 0, items_amount, jnp.int32)
    out2 = jax.block_until_ready(
        mf_forward(uc2, ic2, user_factors, item_factors, w, b))
    ref2 = reference_forward(uc2, ic2, user_factors, item_factors, w, b)
    assert out2.shape == (batch2, 1)
    assert jnp.allclose(out2, ref2, atol=1e-5, rtol=1e-5)

    print("KERNEL_OK")
</pallas_src>

<mosaic_0001>
module attributes {stable_mosaic.version = 11 : i64} {
  func.func @_mf_kernel(%arg0: i32, %arg1: memref<1x128xi32, #tpu.memory_space<vmem>>, %arg2: memref<1x128xi32, #tpu.memory_space<vmem>>, %arg3: memref<32x16xf32, #tpu.memory_space<vmem>>, %arg4: memref<32x16xf32, #tpu.memory_space<vmem>>, %arg5: memref<32x1xf32, #tpu.memory_space<vmem>>, %arg6: memref<1x1xf32, #tpu.memory_space<smem>>, %arg7: memref<1x128xf32, #tpu.memory_space<vmem>>) attributes {dimension_semantics = [#tpu.dimension_semantics<parallel>], iteration_bounds = array<i64: 1>, scalar_prefetch = 0 : i64, scratch_operands = 0 : i64, tpu.core_type = #tpu.core_type<tc>, window_params = [{transform_indices = @transform_0, window_bounds = array<i64: 1, 128>}, {transform_indices = @transform_1, window_bounds = array<i64: 1, 128>}, {pipeline_mode = #tpu.pipeline_mode<synchronous>, transform_indices = @transform_2, window_bounds = array<i64: 32, 16>}, {pipeline_mode = #tpu.pipeline_mode<synchronous>, transform_indices = @transform_3, window_bounds = array<i64: 32, 16>}, {pipeline_mode = #tpu.pipeline_mode<synchronous>, transform_indices = @transform_4, window_bounds = array<i64: 32, 1>}, {transform_indices = @transform_5, window_bounds = array<i64: 1, 1>}, {transform_indices = @transform_6, window_bounds = array<i64: 1, 128>}]} {
    %c0 = arith.constant 0 : index
    %c0_0 = arith.constant 0 : index
    %0 = vector.load %arg1[%c0, %c0_0] : memref<1x128xi32, #tpu.memory_space<vmem>>, vector<1x128xi32>
    %c0_1 = arith.constant 0 : index
    %c0_2 = arith.constant 0 : index
    %1 = vector.load %arg2[%c0_1, %c0_2] : memref<1x128xi32, #tpu.memory_space<vmem>>, vector<1x128xi32>
    %2 = tpu.iota {dimensions = array<i32: 0>} : vector<16x128xi32>
    %3 = vector.broadcast %0 : vector<1x128xi32> to vector<16x128xi32>
    %4 = arith.cmpi eq, %2, %3 : vector<16x128xi32>
    %5 = arith.extui %4 : vector<16x128xi1> to vector<16x128xi32>
    %6 = arith.sitofp %5 : vector<16x128xi32> to vector<16x128xf32>
    %7 = tpu.iota {dimensions = array<i32: 0>} : vector<16x128xi32>
    %8 = vector.broadcast %1 : vector<1x128xi32> to vector<16x128xi32>
    %9 = arith.cmpi eq, %7, %8 : vector<16x128xi32>
    %10 = arith.extui %9 : vector<16x128xi1> to vector<16x128xi32>
    %11 = arith.sitofp %10 : vector<16x128xi32> to vector<16x128xf32>
    %c0_3 = arith.constant 0 : index
    %c0_4 = arith.constant 0 : index
    %12 = vector.load %arg3[%c0_3, %c0_4] : memref<32x16xf32, #tpu.memory_space<vmem>>, vector<32x16xf32>
    %cst = arith.constant dense<0.000000e+00> : vector<32x128xf32>
    %13 = tpu.matmul %12, %6, %cst {dimension_numbers = #tpu.dot_dimension_numbers<[1], [0], [0], [1], [0, 0, 1, 1], [], []>} : vector<32x16xf32>, vector<16x128xf32>, vector<32x128xf32> -> vector<32x128xf32>
    %c0_5 = arith.constant 0 : index
    %c0_6 = arith.constant 0 : index
    %14 = vector.load %arg4[%c0_5, %c0_6] : memref<32x16xf32, #tpu.memory_space<vmem>>, vector<32x16xf32>
    %cst_7 = arith.constant dense<0.000000e+00> : vector<32x128xf32>
    %15 = tpu.matmul %14, %11, %cst_7 {dimension_numbers = #tpu.dot_dimension_numbers<[1], [0], [0], [1], [0, 0, 1, 1], [], []>} : vector<32x16xf32>, vector<16x128xf32>, vector<32x128xf32> -> vector<32x128xf32>
    %16 = arith.mulf %13, %15 : vector<32x128xf32>
    %c0_8 = arith.constant 0 : index
    %c0_9 = arith.constant 0 : index
    %17 = vector.load %arg5[%c0_8, %c0_9] : memref<32x1xf32, #tpu.memory_space<vmem>>, vector<32x1xf32>
    %18 = vector.broadcast %17 : vector<32x1xf32> to vector<32x128xf32>
    %19 = arith.mulf %16, %18 : vector<32x128xf32>
    %cst_10 = arith.constant dense<0.000000e+00> : vector<128xf32>
    %20 = vector.multi_reduction <add>, %19, %cst_10 [0] : vector<32x128xf32> to vector<128xf32>
    %21 = vector.shape_cast %20 : vector<128xf32> to vector<1x128xf32>
    %c0_11 = arith.constant 0 : index
    %c0_12 = arith.constant 0 : index
    %22 = memref.load %arg6[%c0_11, %c0_12] : memref<1x1xf32, #tpu.memory_space<smem>>
    %23 = vector.broadcast %22 : f32 to vector<1x128xf32>
    %24 = arith.addf %21, %23 : vector<1x128xf32>
    %cst_13 = arith.constant 0.000000e+00 : f32
    %25 = vector.broadcast %cst_13 : f32 to vector<1x128xf32>
    %26 = arith.maximumf %24, %25 : vector<1x128xf32>
    %c0_14 = arith.constant 0 : index
    %c0_15 = arith.constant 0 : index
    %27 = vector.load %arg7[%c0_14, %c0_15] : memref<1x128xf32, #tpu.memory_space<vmem>>, vector<1x128xf32>
    tpu.vector_store %arg7[%c0_14, %c0_15], %26 {strides = array<i32>} : memref<1x128xf32, #tpu.memory_space<vmem>>, vector<1x128xf32>,
    return
  }
  func.func @transform_0(%arg0: i32) -> (i32, i32) {
    %c0_i32 = arith.constant 0 : i32
    %c0_i32_0 = arith.constant 0 : i32
    return %c0_i32, %arg0 : i32, i32
  }
  func.func @transform_1(%arg0: i32) -> (i32, i32) {
    %c0_i32 = arith.constant 0 : i32
    %c0_i32_0 = arith.constant 0 : i32
    return %c0_i32, %arg0 : i32, i32
  }
  func.func @transform_2(%arg0: i32) -> (i32, i32) {
    %c0_i32 = arith.constant 0 : i32
    %c0_i32_0 = arith.constant 0 : i32
    %c0_i32_1 = arith.constant 0 : i32
    return %c0_i32, %c0_i32_0 : i32, i32
  }
  func.func @transform_3(%arg0: i32) -> (i32, i32) {
    %c0_i32 = arith.constant 0 : i32
    %c0_i32_0 = arith.constant 0 : i32
    %c0_i32_1 = arith.constant 0 : i32
    return %c0_i32, %c0_i32_0 : i32, i32
  }
  func.func @transform_4(%arg0: i32) -> (i32, i32) {
    %c0_i32 = arith.constant 0 : i32
    %c0_i32_0 = arith.constant 0 : i32
    %c0_i32_1 = arith.constant 0 : i32
    return %c0_i32, %c0_i32_0 : i32, i32
  }
  func.func @transform_5(%arg0: i32) -> (i32, i32) {
    %c0_i32 = arith.constant 0 : i32
    %c0_i32_0 = arith.constant 0 : i32
    %c0_i32_1 = arith.constant 0 : i32
    return %c0_i32, %c0_i32_0 : i32, i32
  }
  func.func @transform_6(%arg0: i32) -> (i32, i32) {
    %c0_i32 = arith.constant 0 : i32
    %c0_i32_0 = arith.constant 0 : i32
    return %c0_i32, %arg0 : i32, i32
  }
}

</mosaic_0001>

<bundles_post_ra>
// kernel: tpu_custom_call.1
= control target key start
LH: loop header
LB: loop body
LE: loop exit
PB: predicated region body
PF: predicated region fallthrough
CT: control target
= control target key end

     0   :  { %v27_v0 = vlaneseq  ;;  %vm54_vm0 = vcmask 130048   ;;  %v390_v6 = vmov 0   ;;  %s484_s0 = inlined_call_operand.vmem [shape: s32[1,128], index: 0, kind: input, shape index: {}]   ;;  %s485_s1 = inlined_call_operand.vmem [shape: s32[1,128], index: 1, kind: input, shape index: {}]   ;;  %s486_s2 = inlined_call_operand.vmem [shape: f32[32,16], index: 2, kind: input, shape index: {}]   ;;  %s487_s3 = inlined_call_operand.vmem [shape: f32[32,16], index: 3, kind: input, shape index: {}]   ;;  %s488_s4 = inlined_call_operand.vmem [shape: f32[32,1], index: 4, kind: input, shape index: {}]   ;;  %s489_s5 = inlined_call_operand.<no memory space> [shape: f32[1,1], index: 5, kind: input, shape index: {}]   ;;  %s490_s6 = inlined_call_operand.hbm [shape: f32[1,128], index: 6, kind: output, shape index: {}]  }
   0x1   :  { %v50_v1 = vld [vmem:[%s486_s2] sm:$0xff]  ;;  %366 = vset.pattern.permute.xlu0 %v390_v6  ;;  %367 = vset.pattern.permute.xlu1 %v390_v6  ;;  %v259_v8 = vld [vmem:[%s488_s4 + $0x10] sm:$0xff] }
   0x2   :  { %v152_v2 = vld [vmem:[%s487_s3] sm:$0xff]  ;;  %v28_v4 = vshrl.u32 %v27_v0, 7  ;;  %347 = vmatprep.mubr.msk.f32.mxu0 %vm54_vm0, %v50_v1  ;;  %273 = vperm.xlu1 %367, %v259_v8  }
   0x3   :  { %v313_v3 = vld [vmem:[%s484_s0] ss:$0 sm:$0xff]  ;;  %357 = vmatprep.mubr.msk.f32.mxu1 %vm54_vm0, %v152_v2 }
   0x4   :  { %v316_v5 = vld [vmem:[%s485_s1] ss:$0 sm:$0xff]  ;;  %v29_v9 = vadd.s32 8, %v28_v4 }
   0x5   :  { %v257_v7 = vld [vmem:[%s488_s4] sm:$0xff] }
   0x6   :  { %263 = vperm.xlu0 %366, %v257_v7  }
   0x7   :  { %12 = vsyncpa [#allocation4], 0  ;;  %vm34_vm1 = vcmp.eq.s32.totalorder %v28_v4, %v313_v3  ;;  %vm35_vm2 = vcmp.eq.s32.totalorder %v29_v9, %v313_v3  ;;  %vm44_vm3 = vcmp.eq.s32.totalorder %v28_v4, %v316_v5  ;;  %vm45_vm4 = vcmp.eq.s32.totalorder %v29_v9, %v316_v5  ;;  %v51_v11 = vld [vmem:[%s486_s2 + $0x8] sm:$0xff]  ;;  %v52_v13 = vld [vmem:[%s486_s2 + $0x10] sm:$0xff] }
   0x8   :  { %v391_v10 = vmov 1.0   ;;  %v153_v12 = vld [vmem:[%s487_s3 + $0x8] sm:$0xff]  ;;  %v154_v14 = vld [vmem:[%s487_s3 + $0x10] sm:$0xff]  ;;  %v260_v16 = vld [vmem:[%s488_s4 + $0x18] sm:$0xff]  ;;  %v295_v47 = vstv %s489_s5 }
   0x9   :  { %343 = vmatprep.subr.msk.mxu0 %vm35_vm2, %v391_v10  ;;  %353 = vmatprep.subr.msk.mxu1 %vm45_vm4, %v391_v10  ;;  %v258_v15 = vld [vmem:[%s488_s4 + $0x8] sm:$0xff]  ;;  %v53_v17 = vld [vmem:[%s486_s2 + $0x18] sm:$0xff]  ;;  %s392_s4 = smov [#allocation3]  }
   0xa   :  { %344 = vmatpush3.msk.msra.mxu0 %vm35_vm2, %v391_v10  ;;  %354 = vmatpush3.msk.msra.mxu1 %vm45_vm4, %v391_v10  ;;  %v155_v18 = vld [vmem:[%s487_s3 + $0x18] sm:$0xff]  ;;  %s305_s23 = sshll.u32 %s392_s4, 4  ;;  %s306_s23 = int_to_ptr.vmem [resolvable:$true] %s305_s23 }
   0xb   :  { %345 = vmatprep.subr.msk.mxu0 %vm34_vm1, %v391_v10  ;;  %355 = vmatprep.subr.msk.mxu1 %vm44_vm3, %v391_v10  ;;  %s368_s24 = scalar_lea.vmem %s306_s23, 16  ;;  %s372_s25 = scalar_lea.vmem %s306_s23, 32 }
   0xc   :  { %346 = vmatpush3.msk.msra.mxu0 %vm34_vm1, %v391_v10  ;;  %356 = vmatpush3.msk.msra.mxu1 %vm44_vm3, %v391_v10  ;;  %p369_p0 = scmp.ne.s32.totalorder %s306_s23, %s368_s24  ;;  %p373_p1 = scmp.lt.s32.totalorder %s306_s23, %s306_s23 }
   0xd   :  { %348 = vmatmul.mubr.msk.f32.vlgmr.msra.gmra.mxu0 %vm54_vm0, %v51_v11  ;;  %358 = vmatmul.mubr.msk.f32.vlgmr.msra.gmra.mxu1 %vm54_vm0, %v153_v12  ;;  %p374_p2 = scmp.lt.s32.totalorder %s372_s25, %s368_s24 }
   0xe   :  { %350 = vmatprep.mubr.msk.f32.mxu0 %vm54_vm0, %v52_v13  ;;  %360 = vmatprep.mubr.msk.f32.mxu1 %vm54_vm0, %v154_v14 }
   0xf   :  { %268 = vperm.xlu0 %366, %v258_v15   ;;  %278 = vperm.xlu1 %367, %v260_v16   ;;  %p375_p3 = por %p374_p2, %p373_p1 }
  0x11   :  { %351 = vmatmul.mubr.msk.f32.gmra.mxu0 %vm54_vm0, %v53_v17  ;;  %361 = vmatmul.mubr.msk.f32.gmra.mxu1 %vm54_vm0, %v155_v18  ;;  %p376_p4 = pnand %p375_p3, %p369_p0 }
  0x7d   :  { %v274_v22 = vpop.permute.xlu1 %273 }
  0x81   :  { %v264_v19 = vpop.permute.xlu0 %263 }
  0x8a   :  { %v269_v26 = vpop.permute.xlu0 %268  ;;  %v279_v36 = vpop.permute.xlu1 %278 }
  0xcd   :  { %v349_v20 = vpop.f32.mrf.mxu0  ;;  %v359_v21 = vpop.f32.mrf.mxu1 }
  0xce   :  { %v254_v25 = vmul.f32 %v359_v21, %v349_v20 }
  0xcf   :  { %v133_v23 = vpop.f32.mrf.mxu0  ;;  %v234_v24 = vpop.f32.mrf.mxu1 }
  0xd0   :  { %v253_v27 = vmul.f32 %v234_v24, %v133_v23  ;;  %v282_v33 = vmul.f32 %v269_v26, %v254_v25 }
  0xd1   :  { %v352_v28 = vpop.f32.mrf.mxu0  ;;  %v362_v29 = vpop.f32.mrf.mxu1 }
  0xd2   :  { %v281_v30 = vmul.f32 %v264_v19, %v253_v27  ;;  %v256_v34 = vmul.f32 %v362_v29, %v352_v28 }
  0xd3   :  { %v143_v31 = vpop.f32.mrf.mxu0  ;;  %v244_v32 = vpop.f32.mrf.mxu1 }
  0xd4   :  { %v255_v35 = vmul.f32 %v244_v32, %v143_v31  ;;  %v285_v37 = vadd.f32 %v282_v33, %v281_v30  ;;  %v284_v39 = vmul.f32 %v279_v36, %v256_v34 }
  0xd6   :  { %v283_v38 = vmul.f32 %v274_v22, %v255_v35 }
  0xd8   :  { %v286_v40 = vadd.f32 %v285_v37, %v283_v38 }
  0xda   :  { %v287_v41 = vadd.f32 %v286_v40, %v284_v39 }
  0xdc   :  { %v288_v42 = vrot.slane %v287_v41, 4 }
  0xde   :  { %v289_v43 = vadd.f32 %v288_v42, %v287_v41 }
  0xe0   :  { %v290_v44 = vrot.slane %v289_v43, 2 }
  0xe2   :  { %v291_v45 = vadd.f32 %v290_v44, %v289_v43 }
  0xe4   :  { %v292_v46 = vrot.slane %v291_v45, 1 }
  0xe6   :  { %v293_v48 = vadd.f32 %v292_v46, %v291_v45 }
  0xe8   :  { %v296_v49 = vadd.f32 %v295_v47, %v293_v48 }
  0xea   :  { %v297_v50 = vmax.f32 %v296_v49, 0.0 }
  0xec   :  { %298 = vst [vmem:[#allocation3] sm:$0x1] %v297_v50 }
  0xed   :  { %379 = shalt.err (!%p376_p4)
}
  0xee   :  { %308 = dma.vmem_to_hbm [thread:$0]  %s306_s23, 16, %s490_s6, [#allocation4]  }
  0xef   :  { %388 = dma.done.wait [#allocation4], 16  }
  0xf0   :  { %389 = vsyncadd [#allocation4], 4294967280 }
  0xf1   :  { %312 = vsyncpa [#allocation4], 1 }

</bundles_post_ra>
